<compile_context>
chip_gen: v7x
topology: tpu7x:2x2x1
jax: 0.10.0
libtpu: 0.0.40
codegen_flags: <defaults>
</compile_context>

<pallas_src>
import functools

import jax
import jax.numpy as jnp
from jax.experimental import pallas as pl
from jax.experimental.pallas import tpu as pltpu


def _depthconvbr_kernel(x_ref, p_ref, o_ref, *, kernel_size, left_pad):
    """One (rows, L) tile: ReLU -> depthwise conv with BN-scaled taps -> + bias."""
    x = jnp.maximum(x_ref[...].astype(jnp.float32), 0.0)          # ReLU first
    rows, length = x.shape
    p = p_ref[...].astype(jnp.float32)                            # (rows, K+1): scaled taps | bias

    # Center tap initializes the accumulator (saves a zero-fill + add).
    acc = p[:, left_pad:left_pad + 1] * x

    if kernel_size > 1:
        col = jax.lax.broadcasted_iota(jnp.int32, (rows, length), 1)
        for k in range(kernel_size):                               # static unroll, K is small
            if k == left_pad:
                continue
            s = k - left_pad                                       # source offset of tap k
            x_k = pltpu.roll(x, shift=(-s) % length, axis=1)       # XLU lane rotation (free slot)
            # Single-sided 'same'-padding mask: 0 <= col < L, so only one bound
            # per tap can ever fail.
            if s > 0:
                valid = col < (length - s)
            else:
                valid = col >= (-s)
            acc = acc + p[:, k:k + 1] * jnp.where(valid, x_k, 0.0)

    # BN scale is already folded into the taps; only the bias add remains.
    o_ref[...] = (acc + p[:, kernel_size:kernel_size + 1]).astype(o_ref.dtype)


def _sublane_align(dtype) -> int:
    itemsize = jnp.dtype(dtype).itemsize
    if itemsize >= 4:
        return 8
    if itemsize == 2:
        return 16
    return 32


# Per in/out tile budget.  With double-buffered in+out plus the f32 in-kernel
# temporaries this peaks around ~10x the tile size, comfortably under the
# 48 MiB vmem_limit requested below on every generation (v7x has 64 MiB).
_TILE_BUDGET_BYTES = 3 * 1024 * 1024


def _row_block(num_rows: int, length: int, dtype) -> int:
    sub = _sublane_align(dtype)
    itemsize = jnp.dtype(dtype).itemsize
    by_budget = max(sub, _TILE_BUDGET_BYTES // max(1, length * itemsize))
    br = min(num_rows, by_budget)
    # Guarantee >= 2 grid steps (ideally >= 4) when the row count allows, so the
    # ("parallel",) axis can shard across v7x's two TensorCores and the pipeline
    # has steps to overlap.
    if num_rows >= 4 * sub:
        min_steps = 4
    elif num_rows >= 2 * sub:
        min_steps = 2
    else:
        min_steps = 1
    if min_steps > 1:
        br = min(br, num_rows // min_steps)
    if br >= num_rows:
        return num_rows                      # full leading dim is always legal
    return max(sub, (br // sub) * sub)       # aligned block; ragged edge masked by Pallas


def depthconvbr_pallas(x, weight, gamma, beta, running_mean, running_var,
                       eps: float = 1e-5):
    """Fused DepthConvBR forward (eval-mode BN).

    x:      (N, C, L)
    weight: (C, 1, K)  depthwise Conv1d weight (groups=C, bias=False)
    gamma, beta, running_mean, running_var: (C,) BatchNorm1d params / stats
    """
    N, C, L = x.shape
    K = weight.shape[-1]
    left_pad = (K - 1) // 2                   # PyTorch 'same' padding split

    # Fold eval-mode BatchNorm into the conv: scale goes into the taps (conv is
    # linear), bias stays as a single epilogue add.
    scale_c = gamma.astype(jnp.float32) / jnp.sqrt(running_var.astype(jnp.float32) + eps)
    bias_c = beta.astype(jnp.float32) - running_mean.astype(jnp.float32) * scale_c
    w_scaled = weight[:, 0, :].astype(jnp.float32) * scale_c[:, None]          # (C, K)
    params_c = jnp.concatenate([w_scaled, bias_c[:, None]], axis=1)            # (C, K+1)

    # Flatten (N, C) -> rows; replicate the (small) per-channel params per row
    # so the BlockSpecs stay trivially row-tiled.  Extra HBM traffic is
    # (K+1)/L of the activation traffic — negligible for realistic L.
    R = N * C
    x2 = x.reshape(R, L)
    params_rows = jnp.tile(params_c, (N, 1))                                   # (R, K+1)

    br = _row_block(R, L, x.dtype)
    grid = (pl.cdiv(R, br),)

    kernel = functools.partial(_depthconvbr_kernel,
                               kernel_size=K, left_pad=left_pad)

    out = pl.pallas_call(
        kernel,
        out_shape=jax.ShapeDtypeStruct((R, L), x.dtype),
        grid_spec=pltpu.PrefetchScalarGridSpec(
            num_scalar_prefetch=0,
            grid=grid,
            in_specs=[
                pl.BlockSpec((br, L), lambda i: (i, 0)),       # activations (full L per block)
                pl.BlockSpec((br, K + 1), lambda i: (i, 0)),   # scaled taps + folded BN bias
            ],
            out_specs=pl.BlockSpec((br, L), lambda i: (i, 0)),
        ),
        compiler_params=pltpu.CompilerParams(
            dimension_semantics=("parallel",),
            vmem_limit_bytes=48 * 1024 * 1024,
        ),
    )(x2, params_rows)

    return out.reshape(N, C, L)


def _reference(x, weight, gamma, beta, running_mean, running_var, eps=1e-5):
    """Pure-JAX mirror of the PyTorch eval-mode forward (ReLU -> conv -> BN)."""
    N, C, L = x.shape
    K = weight.shape[-1]
    lp = (K - 1) // 2
    rp = (K - 1) - lp
    xr = jnp.maximum(x, 0.0)
    xp = jnp.pad(xr, ((0, 0), (0, 0), (lp, rp)))
    out = jnp.zeros_like(x)
    for k in range(K):
        out = out + weight[:, 0, k][None, :, None] * xp[:, :, k:k + L]
    scale = gamma / jnp.sqrt(running_var + eps)
    bias = beta - running_mean * scale
    return out * scale[None, :, None] + bias[None, :, None]


if __name__ == "__main__":
    key = jax.random.PRNGKey(0)
    eps = 1e-5

    def make_case(case_key, N, C, L, K):
        k1, k2, k3, k4, k5, k6 = jax.random.split(case_key, 6)
        x = jax.random.normal(k1, (N, C, L), dtype=jnp.float32)
        weight = 0.5 * jax.random.normal(k2, (C, 1, K), dtype=jnp.float32)
        gamma = 1.0 + 0.1 * jax.random.normal(k3, (C,), dtype=jnp.float32)
        beta = 0.1 * jax.random.normal(k4, (C,), dtype=jnp.float32)
        rmean = 0.1 * jax.random.normal(k5, (C,), dtype=jnp.float32)
        rvar = jax.random.uniform(k6, (C,), minval=0.5, maxval=1.5,
                                  dtype=jnp.float32)
        return x, weight, gamma, beta, rmean, rvar

    # Small Conv1d-shaped inputs; L kept a multiple of 128 so lanes stay dense.
    cases = [(2, 4, 128, 3), (2, 3, 256, 5)]
    for case_key, (N, C, L, K) in zip(jax.random.split(key, len(cases)), cases):
        x, weight, gamma, beta, rmean, rvar = make_case(case_key, N, C, L, K)
        y = depthconvbr_pallas(x, weight, gamma, beta, rmean, rvar, eps)
        y = jax.block_until_ready(y)
        y_ref = _reference(x, weight, gamma, beta, rmean, rvar, eps)
        assert y.shape == x.shape and y.dtype == x.dtype
        assert bool(jnp.allclose(y, y_ref, atol=1e-4, rtol=1e-4)), (N, C, L, K)

    print("KERNEL_OK")
</pallas_src>

<mosaic_0001>
module attributes {stable_mosaic.version = 11 : i64} {
  func.func @_depthconvbr_kernel(%arg0: i32, %arg1: memref<8x128xf32, #tpu.memory_space<vmem>>, %arg2: memref<8x4xf32, #tpu.memory_space<vmem>>, %arg3: memref<8x128xf32, #tpu.memory_space<vmem>>) attributes {dimension_semantics = [#tpu.dimension_semantics<parallel>], iteration_bounds = array<i64: 1>, scalar_prefetch = 0 : i64, scratch_operands = 0 : i64, tpu.core_type = #tpu.core_type<tc>, window_params = [{transform_indices = @transform_0, window_bounds = array<i64: 8, 128>}, {transform_indices = @transform_1, window_bounds = array<i64: 8, 4>}, {transform_indices = @transform_2, window_bounds = array<i64: 8, 128>}]} {
    %c0 = arith.constant 0 : index
    %c0_0 = arith.constant 0 : index
    %0 = vector.load %arg1[%c0, %c0_0] : memref<8x128xf32, #tpu.memory_space<vmem>>, vector<8x128xf32>
    %cst = arith.constant 0.000000e+00 : f32
    %1 = vector.broadcast %cst : f32 to vector<8x128xf32>
    %2 = arith.maximumf %0, %1 : vector<8x128xf32>
    %c0_1 = arith.constant 0 : index
    %c0_2 = arith.constant 0 : index
    %3 = vector.load %arg2[%c0_1, %c0_2] : memref<8x4xf32, #tpu.memory_space<vmem>>, vector<8x4xf32>
    %4 = vector.extract_strided_slice %3 {offsets = [0, 1], sizes = [8, 1], strides = [1, 1]} : vector<8x4xf32> to vector<8x1xf32>
    %5 = vector.broadcast %4 : vector<8x1xf32> to vector<8x128xf32>
    %6 = arith.mulf %5, %2 : vector<8x128xf32>
    %7 = tpu.iota {dimensions = array<i32: 1>} : vector<8x128xi32>
    %c1_i32 = arith.constant 1 : i32
    %8 = tpu.dynamic_rotate %2 by %c1_i32 dim 1 : vector<8x128xf32>, i32 -> vector<8x128xf32>
    %c1_i32_3 = arith.constant 1 : i32
    %9 = vector.broadcast %c1_i32_3 : i32 to vector<8x128xi32>
    %10 = arith.cmpi sge, %7, %9 : vector<8x128xi32>
    %11 = vector.extract_strided_slice %3 {offsets = [0, 0], sizes = [8, 1], strides = [1, 1]} : vector<8x4xf32> to vector<8x1xf32>
    %cst_4 = arith.constant 0.000000e+00 : f32
    %12 = vector.broadcast %cst_4 : f32 to vector<8x128xf32>
    %13 = arith.select %10, %8, %12 : vector<8x128xi1>, vector<8x128xf32>
    %14 = vector.broadcast %11 : vector<8x1xf32> to vector<8x128xf32>
    %15 = arith.mulf %14, %13 : vector<8x128xf32>
    %16 = arith.addf %6, %15 : vector<8x128xf32>
    %c127_i32 = arith.constant 127 : i32
    %17 = tpu.dynamic_rotate %2 by %c127_i32 dim 1 : vector<8x128xf32>, i32 -> vector<8x128xf32>
    %c127_i32_5 = arith.constant 127 : i32
    %18 = vector.broadcast %c127_i32_5 : i32 to vector<8x128xi32>
    %19 = arith.cmpi slt, %7, %18 : vector<8x128xi32>
    %20 = vector.extract_strided_slice %3 {offsets = [0, 2], sizes = [8, 1], strides = [1, 1]} : vector<8x4xf32> to vector<8x1xf32>
    %cst_6 = arith.constant 0.000000e+00 : f32
    %21 = vector.broadcast %cst_6 : f32 to vector<8x128xf32>
    %22 = arith.select %19, %17, %21 : vector<8x128xi1>, vector<8x128xf32>
    %23 = vector.broadcast %20 : vector<8x1xf32> to vector<8x128xf32>
    %24 = arith.mulf %23, %22 : vector<8x128xf32>
    %25 = arith.addf %16, %24 : vector<8x128xf32>
    %26 = vector.extract_strided_slice %3 {offsets = [0, 3], sizes = [8, 1], strides = [1, 1]} : vector<8x4xf32> to vector<8x1xf32>
    %27 = vector.broadcast %26 : vector<8x1xf32> to vector<8x128xf32>
    %28 = arith.addf %25, %27 : vector<8x128xf32>
    %c0_7 = arith.constant 0 : index
    %c0_8 = arith.constant 0 : index
    %29 = vector.load %arg3[%c0_7, %c0_8] : memref<8x128xf32, #tpu.memory_space<vmem>>, vector<8x128xf32>
    tpu.vector_store %arg3[%c0_7, %c0_8], %28 {strides = array<i32>} : memref<8x128xf32, #tpu.memory_space<vmem>>, vector<8x128xf32>,
    return
  }
  func.func @transform_0(%arg0: i32) -> (i32, i32) {
    %c0_i32 = arith.constant 0 : i32
    %c0_i32_0 = arith.constant 0 : i32
    return %arg0, %c0_i32 : i32, i32
  }
  func.func @transform_1(%arg0: i32) -> (i32, i32) {
    %c0_i32 = arith.constant 0 : i32
    %c0_i32_0 = arith.constant 0 : i32
    return %arg0, %c0_i32 : i32, i32
  }
  func.func @transform_2(%arg0: i32) -> (i32, i32) {
    %c0_i32 = arith.constant 0 : i32
    %c0_i32_0 = arith.constant 0 : i32
    return %arg0, %c0_i32 : i32, i32
  }
}

</mosaic_0001>

<bundles_post_ra>
// kernel: tpu_custom_call.1
= control target key start
LH: loop header
LB: loop body
LE: loop exit
PB: predicated region body
PF: predicated region fallthrough
CT: control target
= control target key end

     0   :  { %v99_v2 = vmov 2   ;;  %v100_v3 = vmov 1   ;;  %s139_s0 = inlined_call_operand.vmem [shape: f32[8,128], index: 0, kind: input, shape index: {}]   ;;  %s140_s1 = inlined_call_operand.vmem [shape: f32[8,4], index: 1, kind: input, shape index: {}]   ;;  %s141_s2 = inlined_call_operand.hbm [shape: f32[8,128], index: 2, kind: output, shape index: {}]  }
   0x1   :  { %v14_v0 = vld [vmem:[%s140_s1] sm:$0xff]  ;;  %72 = vset.pattern.permute.xlu1 %v99_v2  ;;  %70 = vset.pattern.permute.xlu0 %v100_v3 }
   0x2   :  { %v12_v1 = vld [vmem:[%s139_s0] sm:$0xff] }
   0x3   :  { %7 = vsyncpa [#allocation3], 0  ;;  %38 = vperm.xlu1 %72, %v14_v0   ;;  %17 = vperm.xlu0 %70, %v14_v0   ;;  %v13_v4 = vmax.f32 %v12_v1, 0.0  ;;  %v101_v5 = vmov 0   ;;  %s102_s13 = smov 1   ;;  %v103_v6 = vmov 3   ;;  %v21_v7 = vlaneseq }
   0x4   :  { %s104_s1 = smov 127   ;;  %s105_s0 = smov [#allocation2]  }
   0x5   :  { %v22_v8 = vand.u32 127, %v21_v7  ;;  %s55_s14 = sshll.u32 %s105_s0, 4  ;;  %s56_s14 = int_to_ptr.vmem [resolvable:$true] %s55_s14 }
   0x6   :  { %s75_s15 = scalar_lea.vmem %s56_s14, 128  ;;  %p80_p1 = scmp.lt.s32.totalorder %s56_s14, %s56_s14 }
   0x7   :  { %71 = vset.pattern.permute.xlu0 %v101_v5  ;;  %23 = vrot.lane.b32.xlu1 %v13_v4, %s102_s13  ;;  %vm25_vm0 = vcmp.ge.s32.totalorder %v22_v8, 1  ;;  %vm35_vm1 = vcmp.lt.s32.totalorder %v22_v8, 127  ;;  %p76_p0 = scmp.ne.s32.totalorder %s56_s14, %s75_s15  ;;  %p81_p2 = scmp.lt.s32.totalorder %s75_s15, %s75_s15 }
   0x8   :  { %28 = vperm.xlu0 %71, %v14_v0   ;;  %73 = vset.pattern.permute.xlu1 %v103_v6 }
   0x9   :  { %p82_p3 = por %p81_p2, %p80_p1 }
   0xb   :  { %44 = vperm.xlu1 %73, %v14_v0   ;;  %p83_p4 = pnand %p82_p3, %p76_p0 }
   0xc   :  { %33 = vrot.lane.b32.xlu0 %v13_v4, %s104_s1 }
   0xd   :  { %74 = vset.pattern.permute.xlu0 %v103_v6 }
  0x82   :  { %v39_v9 = vpop.permute.xlu1 %38  ;;  %v18_v10 = vpop.permute.xlu0 %17 }
  0x83   :  { %v20_v15 = vmul.f32 %v18_v10, %v13_v4 }
  0x86   :  { %v24_v11 = vpop.permute.xlu1 %23 }
  0x87   :  { %v26_v12 = vsel %vm25_vm0, %v24_v11, 0.0  ;;  %v29_v13 = vpop.permute.xlu0 %28 }
  0x88   :  { %v31_v14 = vmul.f32 %v29_v13, %v26_v12 }
  0x8a   :  { %v32_v18 = vadd.f32 %v31_v14, %v20_v15  ;;  %v45_v20 = vpop.permute.xlu1 %44 }
  0x8b   :  { %v34_v16 = vpop.permute.xlu0 %33 }
  0x8c   :  { %v36_v17 = vsel %vm35_vm1, %v34_v16, 0.0 }
  0x8d   :  { %v41_v19 = vmul.f32 %v39_v9, %v36_v17 }
  0x8f   :  { %v42_v21 = vadd.f32 %v41_v19, %v32_v18 }
  0x91   :  { %v47_v22 = vadd.f32 %v45_v20, %v42_v21 }
  0x93   :  { %48 = vst [vmem:[#allocation2] sm:$0xff] %v47_v22 }
  0x94   :  { %86 = shalt.err (!%p83_p4)
}
  0x95   :  { %s87_s18 = scalar_lea.hbm %s141_s2, 128 }
  0x96   :  { %p88_p5 = scmp.ne.s32.totalorder %s141_s2, %s87_s18  ;;  %p91_p6 = scmp.lt.u32.totalorder %s87_s18, %s141_s2 }
  0x98   :  { %p93_p7 = pnand %p91_p6, %p88_p5 }
  0x9a   :  { %96 = shalt.err (!%p93_p7)
}
  0x9b   :  { %58 = dma.vmem_to_hbm [thread:$0]  %s56_s14, 128, %s141_s2, [#allocation3]  }
  0x9c   :  { %97 = dma.done.wait [#allocation3], 128  }
  0x9d   :  { %98 = vsyncadd [#allocation3], 4294967168 }
  0x9e   :  { %62 = vsyncpa [#allocation3], 1 }

</bundles_post_ra>
